<compile_context>
chip_gen: v7x
topology: tpu7x:2x2x1
jax: 0.10.0
libtpu: 0.0.40
codegen_flags: <defaults>
</compile_context>

<pallas_src>
import jax
import jax.numpy as jnp
from jax import lax
from jax.experimental import pallas as pl
from jax.experimental.pallas import tpu as pltpu


def _rup(a, b):
    return -(-a // b) * b


def _make_kernel(compute_dtype):
    def cast_linear_kernel(x_ref, w_ref, b_ref, o_ref):
        # CastModule in_cast: cast the activation tile as it is consumed
        # (weight/bias were pre-cast once in the wrapper, not per grid step).
        x = x_ref[...].astype(compute_dtype)
        w = w_ref[...]                       # (tn, H) torch layout, already compute_dtype
        # y = x @ W^T, f32 accumulation on the MXU.
        acc = lax.dot_general(
            x, w,
            dimension_numbers=(((1,), (1,)), ((), ())),
            preferred_element_type=jnp.float32,
        )
        acc = acc + b_ref[...]               # bias in f32, broadcast (1, tn) -> (tm, tn)
        # CastModule out_cast.
        o_ref[...] = acc.astype(o_ref.dtype)

    return cast_linear_kernel


def cast_module_forward(x, weight, bias, *,
                        in_cast=jnp.float32, out_cast=jnp.bfloat16,
                        mxu_bf16=False, tm=256, tn=512):
    """CastModule(nn.Linear) forward.

    x: (B, S, H) any float dtype.  weight: (O, H) torch Linear layout.  bias: (O,).
    mxu_bf16=True uses the native bf16-in/f32-accumulate MXU path (slightly relaxes
    the literal in_cast=float32 semantics).
    """
    B, S, H = x.shape
    O = weight.shape[0]
    M = B * S

    compute_dtype = jnp.bfloat16 if mxu_bf16 else (in_cast if in_cast is not None else x.dtype)
    out_dtype = out_cast if out_cast is not None else jnp.float32

    # ---- lane-dense / tile-aligned padding (zero-filled) ----
    Hp = _rup(H, 128)
    tn_eff = min(_rup(tn, 128), _rup(O, 128))
    Op = _rup(O, tn_eff)
    tm_eff = min(tm, _rup(M, 8))
    Mp = _rup(M, tm_eff)

    x2d = x.reshape(M, H)
    xp = jnp.pad(x2d, ((0, Mp - M), (0, Hp - H)))                       # keep input dtype
    wp = jnp.pad(weight.astype(compute_dtype), ((0, Op - O), (0, Hp - H)))
    bp = jnp.pad(bias.astype(jnp.float32), (0, Op - O)).reshape(1, Op)

    grid = (Mp // tm_eff, Op // tn_eff)

    itemsize = lambda dt: jnp.dtype(dt).itemsize
    tile_bytes = (tm_eff * Hp * itemsize(xp.dtype)
                  + tn_eff * Hp * itemsize(wp.dtype)
                  + tn_eff * 4
                  + tm_eff * tn_eff * itemsize(out_dtype))
    # 2x for double-buffering + ~50% headroom; keep under v7x's 64 MiB physical VMEM.
    vmem_limit = int(min(max(3 * tile_bytes, 16 * 1024 * 1024), 48 * 1024 * 1024))

    cost = pl.CostEstimate(
        flops=2 * Mp * Hp * Op,
        transcendentals=0,
        bytes_accessed=(Mp * Hp * itemsize(xp.dtype)
                        + Op * Hp * itemsize(wp.dtype)
                        + Op * 4
                        + Mp * Op * itemsize(out_dtype)),
    )

    outp = pl.pallas_call(
        _make_kernel(compute_dtype),
        out_shape=jax.ShapeDtypeStruct((Mp, Op), out_dtype),
        grid_spec=pltpu.PrefetchScalarGridSpec(
            num_scalar_prefetch=0,
            grid=grid,
            in_specs=[
                pl.BlockSpec((tm_eff, Hp), lambda i, j: (i, 0)),   # x tile
                pl.BlockSpec((tn_eff, Hp), lambda i, j: (j, 0)),   # weight tile (torch layout)
                pl.BlockSpec((1, tn_eff), lambda i, j: (0, j)),    # bias tile
            ],
            out_specs=pl.BlockSpec((tm_eff, tn_eff), lambda i, j: (i, j)),
        ),
        compiler_params=pltpu.CompilerParams(
            dimension_semantics=("parallel", "parallel"),
            vmem_limit_bytes=vmem_limit,
        ),
        cost_estimate=cost,
    )(xp, wp, bp)

    return outp[:M, :O].reshape(B, S, O)


if __name__ == "__main__":
    # Small shapes implied by the module: batch=2, seq=8, hidden=32, out=32.
    B, S, H, O = 2, 8, 32, 32

    key = jax.random.PRNGKey(0)
    kx, kw, kb = jax.random.split(key, 3)

    # Input arrives in bf16 so the in_cast=float32 path is meaningful.
    x = jax.random.normal(kx, (B, S, H), dtype=jnp.float32).astype(jnp.bfloat16)

    # Deterministic synthetic nn.Linear parameters (torch layout: (out, in)).
    weight = jax.random.normal(kw, (O, H), dtype=jnp.float32) * 0.1
    bias = jax.random.normal(kb, (O,), dtype=jnp.float32) * 0.1

    # Pure-JAX reference of CastModule semantics.
    ref = (x.astype(jnp.float32) @ weight.T + bias).astype(jnp.bfloat16)

    # Exact CastModule semantics (in_cast=float32, out_cast=bfloat16).
    out = jax.block_until_ready(cast_module_forward(x, weight, bias))
    assert out.shape == (B, S, O)
    assert out.dtype == jnp.bfloat16
    assert jnp.allclose(out.astype(jnp.float32), ref.astype(jnp.float32),
                        atol=1e-2, rtol=1e-2)

    # Relaxed fast path: bf16 MXU inputs with f32 accumulation (review recommendation).
    out_fast = jax.block_until_ready(cast_module_forward(x, weight, bias, mxu_bf16=True))
    assert out_fast.shape == (B, S, O)
    assert out_fast.dtype == jnp.bfloat16
    assert jnp.allclose(out_fast.astype(jnp.float32), ref.astype(jnp.float32),
                        atol=5e-2, rtol=5e-2)

    print("KERNEL_OK")
</pallas_src>

<mosaic_0001>
module attributes {stable_mosaic.version = 11 : i64} {
  func.func @cast_linear_kernel(%arg0: i32, %arg1: i32, %arg2: memref<16x128xbf16, #tpu.memory_space<vmem>>, %arg3: memref<128x128xf32, #tpu.memory_space<vmem>>, %arg4: memref<1x128xf32, #tpu.memory_space<vmem>>, %arg5: memref<16x128xbf16, #tpu.memory_space<vmem>>) attributes {dimension_semantics = [#tpu.dimension_semantics<parallel>, #tpu.dimension_semantics<parallel>], iteration_bounds = array<i64: 1, 1>, scalar_prefetch = 0 : i64, scratch_operands = 0 : i64, tpu.core_type = #tpu.core_type<tc>, window_params = [{transform_indices = @transform_0, window_bounds = array<i64: 16, 128>}, {transform_indices = @transform_1, window_bounds = array<i64: 128, 128>}, {transform_indices = @transform_2, window_bounds = array<i64: 1, 128>}, {transform_indices = @transform_3, window_bounds = array<i64: 16, 128>}]} {
    %c0 = arith.constant 0 : index
    %c0_0 = arith.constant 0 : index
    %0 = vector.load %arg2[%c0, %c0_0] : memref<16x128xbf16, #tpu.memory_space<vmem>>, vector<16x128xbf16>
    %1 = arith.extf %0 : vector<16x128xbf16> to vector<16x128xf32>
    %c0_1 = arith.constant 0 : index
    %c0_2 = arith.constant 0 : index
    %2 = vector.load %arg3[%c0_1, %c0_2] : memref<128x128xf32, #tpu.memory_space<vmem>>, vector<128x128xf32>
    %cst = arith.constant dense<0.000000e+00> : vector<16x128xf32>
    %3 = tpu.matmul %1, %2, %cst {dimension_numbers = #tpu.dot_dimension_numbers<[1], [1], [0], [0], [0, 0, 1, 0], [], []>} : vector<16x128xf32>, vector<128x128xf32>, vector<16x128xf32> -> vector<16x128xf32>
    %c0_3 = arith.constant 0 : index
    %c0_4 = arith.constant 0 : index
    %4 = vector.load %arg4[%c0_3, %c0_4] : memref<1x128xf32, #tpu.memory_space<vmem>>, vector<1x128xf32>
    %5 = vector.broadcast %4 : vector<1x128xf32> to vector<16x128xf32>
    %6 = arith.addf %3, %5 : vector<16x128xf32>
    %7 = arith.truncf %6 : vector<16x128xf32> to vector<16x128xbf16>
    %c0_5 = arith.constant 0 : index
    %c0_6 = arith.constant 0 : index
    %8 = vector.load %arg5[%c0_5, %c0_6] : memref<16x128xbf16, #tpu.memory_space<vmem>>, vector<16x128xbf16>
    tpu.vector_store %arg5[%c0_5, %c0_6], %7 {strides = array<i32>} : memref<16x128xbf16, #tpu.memory_space<vmem>>, vector<16x128xbf16>,
    return
  }
  func.func @transform_0(%arg0: i32, %arg1: i32) -> (i32, i32) {
    %c0_i32 = arith.constant 0 : i32
    %c0_i32_0 = arith.constant 0 : i32
    return %arg0, %c0_i32 : i32, i32
  }
  func.func @transform_1(%arg0: i32, %arg1: i32) -> (i32, i32) {
    %c0_i32 = arith.constant 0 : i32
    %c0_i32_0 = arith.constant 0 : i32
    return %arg1, %c0_i32 : i32, i32
  }
  func.func @transform_2(%arg0: i32, %arg1: i32) -> (i32, i32) {
    %c0_i32 = arith.constant 0 : i32
    %c0_i32_0 = arith.constant 0 : i32
    return %c0_i32, %arg1 : i32, i32
  }
  func.func @transform_3(%arg0: i32, %arg1: i32) -> (i32, i32) {
    %c0_i32 = arith.constant 0 : i32
    return %arg0, %arg1 : i32, i32
  }
}

</mosaic_0001>

<bundles_post_ra>
// kernel: tpu_custom_call.1
= control target key start
LH: loop header
LB: loop body
LE: loop exit
PB: predicated region body
PF: predicated region fallthrough
CT: control target
= control target key end

     0   :  { %8 = vsyncpa [#allocation3], 0  ;;  %s423_s0 = inlined_call_operand.hbm [shape: bf16[16,128], index: 0, kind: input, shape index: {}]   ;;  %s424_s1 = inlined_call_operand.hbm [shape: f32[128,128], index: 1, kind: input, shape index: {}]   ;;  %s425_s2 = inlined_call_operand.vmem [shape: f32[1,128], index: 2, kind: input, shape index: {}]   ;;  %s426_s3 = inlined_call_operand.hbm [shape: bf16[16,128], index: 3, kind: output, shape index: {}]  }
   0x1   :  { %9 = vsyncpa [#allocation6], 0 }
   0x2   :  { %10 = vsyncpa [#allocation4], 0  ;;  %s351_s12 = smov [#allocation2]   ;;  %s279_s16 = scalar_lea.hbm %s423_s0, 128 }
   0x3   :  { %s16_s13 = sshll.u32 %s351_s12, 4  ;;  %p280_p0 = scmp.ne.s32.totalorder %s423_s0, %s279_s16  ;;  %s17_s13 = int_to_ptr.vmem [resolvable:$true] %s16_s13 }
   0x4   :  { %p283_p1 = scmp.lt.u32.totalorder %s279_s16, %s423_s0 }
   0x6   :  { %p285_p2 = pnand %p283_p1, %p280_p0 }
   0x8   :  { %288 = shalt.err (!%p285_p2)
}
   0x9   :  { %s289_s21 = scalar_lea.vmem %s17_s13, 128  ;;  %p294_p4 = scmp.lt.s32.totalorder %s17_s13, %s17_s13 }
   0xa   :  { %p290_p3 = scmp.ne.s32.totalorder %s17_s13, %s289_s21  ;;  %p295_p5 = scmp.lt.s32.totalorder %s289_s21, %s289_s21 }
   0xc   :  { %p296_p6 = por %p295_p5, %p294_p4 }
   0xe   :  { %p297_p7 = pnand %p296_p6, %p290_p3 }
  0x10   :  { %300 = shalt.err (!%p297_p7)
}
  0x11   :  { %s352_s22 = smov 64   ;;  %s353_s23 = smov 4  }
  0x12   :  { %22 = dma.hbm_to_vmem [thread:$0]  %s423_s0, 128, %s17_s13, [#allocation3], %s352_s22, %s352_s22, %s353_s23  }
  0x13   :  { %s354_s26 = smov [#allocation5]   ;;  %s301_s30 = scalar_lea.hbm %s424_s1, 2048 }
  0x14   :  { %s28_s27 = sshll.u32 %s354_s26, 4  ;;  %p302_p8 = scmp.ne.s32.totalorder %s424_s1, %s301_s30  ;;  %s29_s27 = int_to_ptr.vmem [resolvable:$true] %s28_s27 }
  0x15   :  { %p305_p9 = scmp.lt.u32.totalorder %s301_s30, %s424_s1 }
  0x17   :  { %p307_p10 = pnand %p305_p9, %p302_p8 }
  0x19   :  { %310 = shalt.err (!%p307_p10)
}
  0x1a   :  { %s311_s8 = scalar_lea.vmem %s29_s27, 2048  ;;  %p316_p12 = scmp.lt.s32.totalorder %s29_s27, %s29_s27 }
  0x1b   :  { %p312_p11 = scmp.ne.s32.totalorder %s29_s27, %s311_s8  ;;  %p317_p13 = scmp.lt.s32.totalorder %s311_s8, %s311_s8 }
  0x1d   :  { %p318_p0 = por %p317_p13, %p316_p12 }
  0x1f   :  { %p319_p1 = pnand %p318_p0, %p312_p11 }
  0x21   :  { %322 = shalt.err (!%p319_p1)
}
  0x22   :  { %s355_s0 = smov 128   ;;  %s356_s9 = smov 8  }
  0x23   :  { %34 = dma.hbm_to_vmem [thread:$0]  %s424_s1, 2048, %s29_s27, [#allocation6], %s355_s0, %s355_s0, %s356_s9  }
  0x24   :  { %345 = dma.done.wait [#allocation3], 128  }
  0x25   :  { %346 = vsyncadd [#allocation3], 4294967168 }
  0x26   :  { %347 = dma.done.wait [#allocation6], 2048  }
  0x27   :  { %348 = vsyncadd [#allocation6], 4294965248  ;;  %v47_v0 = vld [vmem:[#allocation5] sm:$0xff]  ;;  %v48_v1 = vld [vmem:[#allocation5 + $0x8] sm:$0xff]  ;;  %s357_s13 = smov [#allocation7]  }
  0x28   :  { %v49_v2 = vld [vmem:[#allocation5 + $0x10] sm:$0xff]  ;;  %v240_v3 = vpack.c.bf16 %v48_v1, %v47_v0  ;;  %v50_v4 = vld [vmem:[#allocation5 + $0x18] sm:$0xff]  ;;  %v51_v7 = vld [vmem:[#allocation5 + $0x20] sm:$0xff]  ;;  %s160_s14 = sshll.u32 %s357_s13, 4  ;;  %s161_s14 = int_to_ptr.vmem [resolvable:$true] %s160_s14 }
  0x29   :  { %v244_v5 = vpack.c.bf16 %v50_v4, %v49_v2  ;;  %v179_v6 = vld [vmem:[#allocation2] sm:$0xff]   ;;  %v52_v8 = vld [vmem:[#allocation5 + $0x28] sm:$0xff]  ;;  %v53_v11 = vld [vmem:[#allocation5 + $0x30] sm:$0xff]  ;;  %s323_s15 = scalar_lea.vmem %s161_s14, 128  ;;  %p328_p3 = scmp.lt.s32.totalorder %s161_s14, %s161_s14 }
  0x2a   :  { %241 = vmatprep.subr.bf16.mxu0 %v240_v3  ;;  %v180_v9 = vunpack.c.l.bf16 %v179_v6  ;;  %v248_v10 = vpack.c.bf16 %v52_v8, %v51_v7  ;;  %v54_v12 = vld [vmem:[#allocation5 + $0x38] sm:$0xff]  ;;  %v55_v14 = vld [vmem:[#allocation5 + $0x40] sm:$0xff]  ;;  %v56_v15 = vld [vmem:[#allocation5 + $0x48] sm:$0xff]  ;;  %v181_v26 = vunpack.c.h.bf16 %v179_v6  ;;  %p324_p2 = scmp.ne.s32.totalorder %s161_s14, %s323_s15  ;;  %p329_p4 = scmp.lt.s32.totalorder %s323_s15, %s323_s15 }
  0x2b   :  { %243 = vmatpush3.bf16.xpose.msra.mxu0 %v240_v3  ;;  %v252_v13 = vpack.c.bf16 %v54_v12, %v53_v11  ;;  %v256_v16 = vpack.c.bf16 %v56_v15, %v55_v14  ;;  %v57_v17 = vld [vmem:[#allocation5 + $0x50] sm:$0xff]  ;;  %v58_v18 = vld [vmem:[#allocation5 + $0x58] sm:$0xff]  ;;  %v59_v20 = vld [vmem:[#allocation5 + $0x60] sm:$0xff] }
  0x2c   :  { %245 = vmatprep.subr.bf16.mxu0 %v244_v5  ;;  %237 = vmatprep.mubr.f32.mxu0 %v180_v9  ;;  %v260_v19 = vpack.c.bf16 %v58_v18, %v57_v17  ;;  %v60_v21 = vld [vmem:[#allocation5 + $0x68] sm:$0xff]  ;;  %v61_v23 = vld [vmem:[#allocation5 + $0x70] sm:$0xff]  ;;  %v62_v24 = vld [vmem:[#allocation5 + $0x78] sm:$0xff]  ;;  %p330_p5 = por %p329_p4, %p328_p3 }
  0x2d   :  { %v264_v22 = vpack.c.bf16 %v60_v21, %v59_v20  ;;  %v268_v25 = vpack.c.bf16 %v62_v24, %v61_v23  ;;  %v173_v27 = vld [vmem:[%s425_s2] ss:$0 sm:$0xff] }
  0x2e   :  { %p331_p6 = pnand %p330_p5, %p324_p2 }
  0x33   :  { %247 = vmatpush3.bf16.xpose.msra.mxu0 %v244_v5 }
  0x34   :  { %249 = vmatprep.subr.bf16.mxu0 %v248_v10 }
  0x3b   :  { %251 = vmatpush3.bf16.xpose.msra.mxu0 %v248_v10 }
  0x3c   :  { %253 = vmatprep.subr.bf16.mxu0 %v252_v13 }
  0x43   :  { %255 = vmatpush3.bf16.xpose.msra.mxu0 %v252_v13 }
  0x44   :  { %257 = vmatprep.subr.bf16.mxu0 %v256_v16 }
  0x4b   :  { %259 = vmatpush3.bf16.xpose.msra.mxu0 %v256_v16 }
  0x4c   :  { %261 = vmatprep.subr.bf16.mxu0 %v260_v19 }
  0x53   :  { %263 = vmatpush3.bf16.xpose.msra.mxu0 %v260_v19 }
  0x54   :  { %265 = vmatprep.subr.bf16.mxu0 %v264_v22 }
  0x5b   :  { %267 = vmatpush3.bf16.xpose.msra.mxu0 %v264_v22 }
  0x5c   :  { %269 = vmatprep.subr.bf16.mxu0 %v268_v25 }
  0x63   :  { %271 = vmatpush3.bf16.xpose.msra.mxu0 %v268_v25 }
  0x6a   :  { %238 = vmatmul.mubr.f32.vlgmr.msra.gmra.mrb[0].mxu0 %v181_v26 }
 0x13d   :  { %v239_v28 = vpop.f32.mrb[0].mxu0 }
 0x13e   :  { %v142_v29 = vadd.f32 %v239_v28, %v173_v27  ;;  %v136_v30 = vpop.f32.mrb[1].mxu0 }
 0x13f   :  { %v137_v31 = vadd.f32 %v173_v27, %v136_v30 }
 0x141   :  { %v185_v32 = vpack.c.bf16 %v142_v29, %v137_v31 }
 0x143   :  { %186 = vst [vmem:[#allocation7] sm:$0xff] %v185_v32  }
 0x144   :  { %334 = shalt.err (!%p331_p6)
}
 0x145   :  { %s335_s2 = scalar_lea.hbm %s426_s3, 128 }
 0x146   :  { %p336_p7 = scmp.ne.s32.totalorder %s426_s3, %s335_s2  ;;  %p339_p8 = scmp.lt.u32.totalorder %s335_s2, %s426_s3 }
 0x148   :  { %p341_p9 = pnand %p339_p8, %p336_p7 }
 0x14a   :  { %344 = shalt.err (!%p341_p9)
}
 0x14b   :  { %166 = dma.vmem_to_hbm [thread:$0]  %s161_s14, 128, %s426_s3, [#allocation4], %s352_s22, %s352_s22, %s353_s23  }
 0x14c   :  { %349 = dma.done.wait [#allocation4], 128  }
 0x14d   :  { %350 = vsyncadd [#allocation4], 4294967168 }
 0x14e   :  { %170 = vsyncpa [#allocation3], 1 }
 0x14f   :  { %171 = vsyncpa [#allocation6], 1 }
 0x150   :  { %172 = vsyncpa [#allocation4], 1 }

</bundles_post_ra>
